<compile_context>
chip_gen: v7x
topology: tpu7x:2x2x1
jax: 0.10.0
libtpu: 0.0.40
codegen_flags: <defaults>
</compile_context>

<pallas_src>
import functools
import math

import jax
import jax.numpy as jnp
from jax.experimental import pallas as pl
from jax.experimental.pallas import tpu as pltpu

_MAX_TN = 16384


def _round_up(x, m):
    return ((x + m - 1) // m) * m


def _vmem_capacity_bytes():
    """Best-effort physical VMEM per TensorCore; conservative (v7x) fallback."""
    try:
        info = pltpu.get_tpu_info()
        for name in ("vmem_capacity_bytes", "vmem_bytes", "vmem_size_bytes"):
            v = getattr(info, name, None)
            if v:
                return int(v)
    except Exception:
        pass
    return 64 << 20          # v7x per-TC size: safe on every generation


def _budgets():
    vmem = _vmem_capacity_bytes()
    vmem_limit = min((vmem * 3) // 4, 100 << 20)   # ~48 MiB v7x, ~96 MiB v5e/v6e
    tile_budget = vmem_limit // 5                  # room for 2x h buf + 2x out buf
    return vmem_limit, tile_budget


def _pick_tn(N, M, d, itemsize, tile_budget):
    # real (lane-padded) VMEM cost per row of a (tn, M*d) block
    lane_bytes = _round_up(M * d, 128) * itemsize
    tn = tile_budget // max(1, lane_bytes)
    tn = max(8, min(int(tn), _MAX_TN))
    tn = min(tn, _round_up(N, 8))
    return max(8, (tn // 8) * 8)


def _is_single_tensorcore_chip():
    try:
        kind = jax.devices()[0].device_kind.lower()
    except Exception:
        return False
    return any(s in kind for s in ("v5 lite", "v5e", "v6 lite", "v6e"))


def _score_kernel(h_ref, wt_ref, b_ref, attn_ref, w_ref, *,
                  n_valid, tn, n_meta, d, tiles_per_part):
    """w_ref[0,0,m] += sum_{valid n in tile} tanh(h[n, m] @ W^T + b) @ attn."""
    p = pl.program_id(0)
    t = pl.program_id(1)

    @pl.when(t == 0)
    def _init():
        w_ref[...] = jnp.zeros_like(w_ref)

    # node-validity mask on the (tn, 1) score column (ragged / padded N)
    node0 = (p * tiles_per_part + t) * tn
    node_ids = node0 + jax.lax.broadcasted_iota(jnp.int32, (tn, 1), 0)
    valid = node_ids < n_valid                                    # (tn, 1)

    b = b_ref[...]                                                # (1, d) f32
    wt = wt_ref[...]                                              # (d, d)
    attn_col = attn_ref[...]                                      # (d, 1)

    parts = []
    for m in range(n_meta):                                       # M small & static
        x = h_ref[:, m * d:(m + 1) * d].astype(wt.dtype)          # (tn, d) static lane slice
        xw = jnp.dot(x, wt, preferred_element_type=jnp.float32)   # MXU
        tv = jnp.tanh(xw + b)                                     # EUP, f32
        col = jnp.dot(tv.astype(attn_col.dtype), attn_col,
                      preferred_element_type=jnp.float32)         # (tn, 1) MXU
        col = jnp.where(valid, col, 0.0)
        parts.append(jnp.sum(col, axis=0, keepdims=True))         # (1, 1)

    # accumulate directly into the (VMEM-resident) output block
    w_ref[0, :, :] = w_ref[0, :, :] + jnp.concatenate(parts, axis=1)   # (1, M)


def _combine_kernel(h_ref, s_ref, out_ref):
    """out[n] = h2[n] @ kron(beta, I_d)  ==  sum_m beta[m] * h[n, m, :]."""
    out_ref[...] = jnp.dot(h_ref[...].astype(s_ref.dtype), s_ref[...],
                           preferred_element_type=jnp.float32).astype(out_ref.dtype)


def attention_forward(h, w_fc, b_fc, attn, *, mxu_dtype=jnp.bfloat16):
    """h: (N, M, d); w_fc: (d, d); b_fc: (d,); attn: (1, d).  Returns (N, d)."""
    N, M, d = h.shape
    itemsize = jnp.dtype(h.dtype).itemsize
    vmem_limit, tile_budget = _budgets()
    tn = _pick_tn(N, M, d, itemsize, tile_budget)

    n_tiles = pl.cdiv(N, tn)
    # 2 partial sums -> both TensorCores on v7x; 1 on known single-TC chips
    num_parts = 1 if (_is_single_tensorcore_chip() or n_tiles < 4) else 2
    tiles_per_part = pl.cdiv(n_tiles, num_parts)
    n_pad = num_parts * tiles_per_part * tn

    # free trailing-dim collapse -> lane-dense 2-D blocks; pad N with zero rows
    h2 = h.reshape(N, M * d)
    if n_pad != N:
        h2 = jnp.pad(h2, ((0, n_pad - N), (0, 0)))

    wt = w_fc.T.astype(mxu_dtype)                       # fc(x) = x @ W^T + b
    b_row = b_fc.reshape(1, d).astype(jnp.float32)
    attn_col = attn.reshape(d, 1).astype(mxu_dtype)

    # --- Pass A: per-metapath attention scores, accumulated over node tiles --
    score_kernel = functools.partial(
        _score_kernel, n_valid=N, tn=tn, n_meta=M, d=d,
        tiles_per_part=tiles_per_part)

    w_parts = pl.pallas_call(
        score_kernel,
        out_shape=jax.ShapeDtypeStruct((num_parts, 1, M), jnp.float32),
        grid=(num_parts, tiles_per_part),
        in_specs=[
            pl.BlockSpec((tn, M * d), lambda p, t: (p * tiles_per_part + t, 0)),
            pl.BlockSpec((d, d), lambda p, t: (0, 0)),
            pl.BlockSpec((1, d), lambda p, t: (0, 0)),
            pl.BlockSpec((d, 1), lambda p, t: (0, 0)),
        ],
        out_specs=pl.BlockSpec((1, 1, M), lambda p, t: (p, 0, 0)),
        compiler_params=pltpu.CompilerParams(
            dimension_semantics=("parallel", "arbitrary"),
            vmem_limit_bytes=vmem_limit),
    )(h2, wt, b_row, attn_col)

    # tiny glue: partial-sum add, mean over N, softmax over M metapaths
    w = jnp.sum(w_parts, axis=0)[0] / N                 # (M,)
    beta = jax.nn.softmax(w, axis=0)                    # (M,)

    # --- Pass B: weighted combination as one lane-dense MXU matmul per tile --
    eye = jnp.eye(d, dtype=jnp.float32)
    s_mat = (beta[:, None, None] * eye[None]).reshape(M * d, d).astype(mxu_dtype)

    z_pad = pl.pallas_call(
        _combine_kernel,
        out_shape=jax.ShapeDtypeStruct((n_pad, d), h.dtype),
        grid=(n_pad // tn,),
        in_specs=[
            pl.BlockSpec((tn, M * d), lambda i: (i, 0)),
            pl.BlockSpec((M * d, d), lambda i: (0, 0)),
        ],
        out_specs=pl.BlockSpec((tn, d), lambda i: (i, 0)),
        compiler_params=pltpu.CompilerParams(
            dimension_semantics=("parallel",),
            vmem_limit_bytes=vmem_limit),
    )(h2, s_mat)
    return z_pad[:N]


def reference(h, w_fc, b_fc, attn):
    t = jnp.tanh(h @ w_fc.T + b_fc)                     # (N, M, d)
    w = t.mean(axis=0) @ attn.reshape(-1, 1)            # (M, 1)
    beta = jax.nn.softmax(w, axis=0)                    # (M, 1)
    return (beta[None, :, :] * h).sum(axis=1)           # (N, d)


if __name__ == "__main__":
    N, M, d = 16, 4, 32
    key = jax.random.PRNGKey(0)
    k_w, k_a, k_b, k_h = jax.random.split(key, 4)

    # deterministic init matching the module's reset_parameters (gain = sqrt(2))
    gain = math.sqrt(2.0)
    std_w = gain * math.sqrt(2.0 / (d + d))             # xavier_normal for fc.weight (d, d)
    w_fc = std_w * jax.random.normal(k_w, (d, d), jnp.float32)
    std_a = gain * math.sqrt(2.0 / (1 + d))             # xavier_normal for attn (1, d)
    attn = std_a * jax.random.normal(k_a, (1, d), jnp.float32)
    bound = 1.0 / math.sqrt(d)                          # default nn.Linear bias init
    b_fc = jax.random.uniform(k_b, (d,), jnp.float32, -bound, bound)

    h = jax.random.normal(k_h, (N, M, d), jnp.float32)

    z_ref = reference(h, w_fc, b_fc, attn)

    # high-precision path (f32 MXU operands) — tight tolerance
    z32 = jax.block_until_ready(
        attention_forward(h, w_fc, b_fc, attn, mxu_dtype=jnp.float32))
    assert z32.shape == (N, d)
    assert jnp.allclose(z32, z_ref, atol=1e-3, rtol=1e-3), "f32 mismatch vs reference"

    # default fast path (bf16 MXU operands, f32 accumulation) — looser tolerance
    zbf = jax.block_until_ready(
        attention_forward(h, w_fc, b_fc, attn, mxu_dtype=jnp.bfloat16))
    assert zbf.shape == (N, d)
    assert jnp.allclose(zbf, z_ref, atol=1e-1, rtol=1e-1), "bf16 mismatch vs reference"

    print("KERNEL_OK")
</pallas_src>

<mosaic_0001>
module attributes {stable_mosaic.version = 11 : i64} {
  func.func @_score_kernel(%arg0: i32, %arg1: i32, %arg2: memref<16x128xf32, #tpu.memory_space<vmem>>, %arg3: memref<32x32xf32, #tpu.memory_space<vmem>>, %arg4: memref<1x32xf32, #tpu.memory_space<vmem>>, %arg5: memref<32x1xf32, #tpu.memory_space<vmem>>, %arg6: memref<1x1x4xf32, #tpu.memory_space<vmem>>) attributes {dimension_semantics = [#tpu.dimension_semantics<parallel>, #tpu.dimension_semantics<arbitrary>], iteration_bounds = array<i64: 1, 1>, scalar_prefetch = 0 : i64, scratch_operands = 0 : i64, tpu.core_type = #tpu.core_type<tc>, window_params = [{transform_indices = @transform_0, window_bounds = array<i64: 16, 128>}, {pipeline_mode = #tpu.pipeline_mode<synchronous>, transform_indices = @transform_1, window_bounds = array<i64: 32, 32>}, {pipeline_mode = #tpu.pipeline_mode<synchronous>, transform_indices = @transform_2, window_bounds = array<i64: 1, 32>}, {pipeline_mode = #tpu.pipeline_mode<synchronous>, transform_indices = @transform_3, window_bounds = array<i64: 32, 1>}, {transform_indices = @transform_4, window_bounds = array<i64: 1, 1, 4>}]} {
    %c0_i32 = arith.constant 0 : i32
    %0 = arith.cmpi eq, %arg1, %c0_i32 : i32
    %1 = arith.extui %0 : i1 to i32
    %c0_i32_0 = arith.constant 0 : i32
    %2 = arith.cmpi ne, %1, %c0_i32_0 : i32
    scf.if %2 {
      %cst_33 = arith.constant 0.000000e+00 : f32
      %61 = vector.broadcast %cst_33 : f32 to vector<1x1x4xf32>
      %c0_34 = arith.constant 0 : index
      %c0_35 = arith.constant 0 : index
      %c0_36 = arith.constant 0 : index
      %62 = vector.load %arg6[%c0_34, %c0_35, %c0_36] : memref<1x1x4xf32, #tpu.memory_space<vmem>>, vector<1x1x4xf32>
      tpu.vector_store %arg6[%c0_34, %c0_35, %c0_36], %61 {strides = array<i32>} : memref<1x1x4xf32, #tpu.memory_space<vmem>>, vector<1x1x4xf32>,
    } else {
    }
    %c1_i32 = arith.constant 1 : i32
    %3 = arith.muli %arg0, %c1_i32 : i32
    %4 = arith.addi %3, %arg1 : i32
    %c16_i32 = arith.constant 16 : i32
    %5 = arith.muli %4, %c16_i32 : i32
    %6 = tpu.iota {dimensions = array<i32: 0>} : vector<16x1xi32>
    %7 = vector.broadcast %5 : i32 to vector<16x1xi32>
    %8 = arith.addi %7, %6 : vector<16x1xi32>
    %c16_i32_1 = arith.constant 16 : i32
    %9 = vector.broadcast %c16_i32_1 : i32 to vector<16x1xi32>
    %10 = arith.cmpi slt, %8, %9 : vector<16x1xi32>
    %c0 = arith.constant 0 : index
    %c0_2 = arith.constant 0 : index
    %11 = vector.load %arg4[%c0, %c0_2] : memref<1x32xf32, #tpu.memory_space<vmem>>, vector<1x32xf32>
    %c0_3 = arith.constant 0 : index
    %c0_4 = arith.constant 0 : index
    %12 = vector.load %arg3[%c0_3, %c0_4] : memref<32x32xf32, #tpu.memory_space<vmem>>, vector<32x32xf32>
    %c0_5 = arith.constant 0 : index
    %c0_6 = arith.constant 0 : index
    %13 = vector.load %arg5[%c0_5, %c0_6] : memref<32x1xf32, #tpu.memory_space<vmem>>, vector<32x1xf32>
    %c0_7 = arith.constant 0 : index
    %c0_8 = arith.constant 0 : index
    %14 = vector.load %arg2[%c0_7, %c0_8] : memref<16x128xf32, #tpu.memory_space<vmem>>, vector<16x32xf32>
    %cst = arith.constant dense<0.000000e+00> : vector<16x32xf32>
    %15 = tpu.matmul %14, %12, %cst {dimension_numbers = #tpu.dot_dimension_numbers<[1], [0], [0], [1], [0, 0, 1, 1], [], []>} : vector<16x32xf32>, vector<32x32xf32>, vector<16x32xf32> -> vector<16x32xf32>
    %16 = vector.broadcast %11 : vector<1x32xf32> to vector<16x32xf32>
    %17 = arith.addf %15, %16 : vector<16x32xf32>
    %18 = math.tanh %17 : vector<16x32xf32>
    %cst_9 = arith.constant dense<0.000000e+00> : vector<16x1xf32>
    %19 = tpu.matmul %18, %13, %cst_9 {dimension_numbers = #tpu.dot_dimension_numbers<[1], [0], [0], [1], [0, 0, 1, 1], [], []>} : vector<16x32xf32>, vector<32x1xf32>, vector<16x1xf32> -> vector<16x1xf32>
    %cst_10 = arith.constant 0.000000e+00 : f32
    %20 = vector.broadcast %cst_10 : f32 to vector<16x1xf32>
    %21 = arith.select %10, %19, %20 : vector<16x1xi1>, vector<16x1xf32>
    %cst_11 = arith.constant dense<0.000000e+00> : vector<1xf32>
    %22 = vector.multi_reduction <add>, %21, %cst_11 [0] : vector<16x1xf32> to vector<1xf32>
    %23 = vector.shape_cast %22 : vector<1xf32> to vector<1x1xf32>
    %c0_12 = arith.constant 0 : index
    %c32 = arith.constant 32 : index
    %24 = vector.load %arg2[%c0_12, %c32] : memref<16x128xf32, #tpu.memory_space<vmem>>, vector<16x32xf32>
    %cst_13 = arith.constant dense<0.000000e+00> : vector<16x32xf32>
    %25 = tpu.matmul %24, %12, %cst_13 {dimension_numbers = #tpu.dot_dimension_numbers<[1], [0], [0], [1], [0, 0, 1, 1], [], []>} : vector<16x32xf32>, vector<32x32xf32>, vector<16x32xf32> -> vector<16x32xf32>
    %26 = vector.broadcast %11 : vector<1x32xf32> to vector<16x32xf32>
    %27 = arith.addf %25, %26 : vector<16x32xf32>
    %28 = math.tanh %27 : vector<16x32xf32>
    %cst_14 = arith.constant dense<0.000000e+00> : vector<16x1xf32>
    %29 = tpu.matmul %28, %13, %cst_14 {dimension_numbers = #tpu.dot_dimension_numbers<[1], [0], [0], [1], [0, 0, 1, 1], [], []>} : vector<16x32xf32>, vector<32x1xf32>, vector<16x1xf32> -> vector<16x1xf32>
    %cst_15 = arith.constant 0.000000e+00 : f32
    %30 = vector.broadcast %cst_15 : f32 to vector<16x1xf32>
    %31 = arith.select %10, %29, %30 : vector<16x1xi1>, vector<16x1xf32>
    %cst_16 = arith.constant dense<0.000000e+00> : vector<1xf32>
    %32 = vector.multi_reduction <add>, %31, %cst_16 [0] : vector<16x1xf32> to vector<1xf32>
    %33 = vector.shape_cast %32 : vector<1xf32> to vector<1x1xf32>
    %c0_17 = arith.constant 0 : index
    %c64 = arith.constant 64 : index
    %34 = vector.load %arg2[%c0_17, %c64] : memref<16x128xf32, #tpu.memory_space<vmem>>, vector<16x32xf32>
    %cst_18 = arith.constant dense<0.000000e+00> : vector<16x32xf32>
    %35 = tpu.matmul %34, %12, %cst_18 {dimension_numbers = #tpu.dot_dimension_numbers<[1], [0], [0], [1], [0, 0, 1, 1], [], []>} : vector<16x32xf32>, vector<32x32xf32>, vector<16x32xf32> -> vector<16x32xf32>
    %36 = vector.broadcast %11 : vector<1x32xf32> to vector<16x32xf32>
    %37 = arith.addf %35, %36 : vector<16x32xf32>
    %38 = math.tanh %37 : vector<16x32xf32>
    %cst_19 = arith.constant dense<0.000000e+00> : vector<16x1xf32>
    %39 = tpu.matmul %38, %13, %cst_19 {dimension_numbers = #tpu.dot_dimension_numbers<[1], [0], [0], [1], [0, 0, 1, 1], [], []>} : vector<16x32xf32>, vector<32x1xf32>, vector<16x1xf32> -> vector<16x1xf32>
    %cst_20 = arith.constant 0.000000e+00 : f32
    %40 = vector.broadcast %cst_20 : f32 to vector<16x1xf32>
    %41 = arith.select %10, %39, %40 : vector<16x1xi1>, vector<16x1xf32>
    %cst_21 = arith.constant dense<0.000000e+00> : vector<1xf32>
    %42 = vector.multi_reduction <add>, %41, %cst_21 [0] : vector<16x1xf32> to vector<1xf32>
    %43 = vector.shape_cast %42 : vector<1xf32> to vector<1x1xf32>
    %c0_22 = arith.constant 0 : index
    %c96 = arith.constant 96 : index
    %44 = vector.load %arg2[%c0_22, %c96] : memref<16x128xf32, #tpu.memory_space<vmem>>, vector<16x32xf32>
    %cst_23 = arith.constant dense<0.000000e+00> : vector<16x32xf32>
    %45 = tpu.matmul %44, %12, %cst_23 {dimension_numbers = #tpu.dot_dimension_numbers<[1], [0], [0], [1], [0, 0, 1, 1], [], []>} : vector<16x32xf32>, vector<32x32xf32>, vector<16x32xf32> -> vector<16x32xf32>
    %46 = vector.broadcast %11 : vector<1x32xf32> to vector<16x32xf32>
    %47 = arith.addf %45, %46 : vector<16x32xf32>
    %48 = math.tanh %47 : vector<16x32xf32>
    %cst_24 = arith.constant dense<0.000000e+00> : vector<16x1xf32>
    %49 = tpu.matmul %48, %13, %cst_24 {dimension_numbers = #tpu.dot_dimension_numbers<[1], [0], [0], [1], [0, 0, 1, 1], [], []>} : vector<16x32xf32>, vector<32x1xf32>, vector<16x1xf32> -> vector<16x1xf32>
    %cst_25 = arith.constant 0.000000e+00 : f32
    %50 = vector.broadcast %cst_25 : f32 to vector<16x1xf32>
    %51 = arith.select %10, %49, %50 : vector<16x1xi1>, vector<16x1xf32>
    %cst_26 = arith.constant dense<0.000000e+00> : vector<1xf32>
    %52 = vector.multi_reduction <add>, %51, %cst_26 [0] : vector<16x1xf32> to vector<1xf32>
    %53 = vector.shape_cast %52 : vector<1xf32> to vector<1x1xf32>
    %c0_27 = arith.constant 0 : index
    %c0_28 = arith.constant 0 : index
    %c0_29 = arith.constant 0 : index
    %54 = vector.load %arg6[%c0_27, %c0_28, %c0_29] : memref<1x1x4xf32, #tpu.memory_space<vmem>>, vector<1x1x4xf32>
    %55 = vector.shape_cast %54 : vector<1x1x4xf32> to vector<1x4xf32>
    %56 = tpu.concatenate %23, %33, %43, %53 in 1 : vector<1x1xf32>, vector<1x1xf32>, vector<1x1xf32>, vector<1x1xf32> -> vector<1x4xf32>
    %57 = arith.addf %55, %56 : vector<1x4xf32>
    %c0_30 = arith.constant 0 : index
    %c0_31 = arith.constant 0 : index
    %c0_32 = arith.constant 0 : index
    %58 = vector.load %arg6[%c0_30, %c0_31, %c0_32] : memref<1x1x4xf32, #tpu.memory_space<vmem>>, vector<1x1x4xf32>
    %59 = vector.shape_cast %58 : vector<1x1x4xf32> to vector<1x4xf32>
    %60 = vector.shape_cast %57 : vector<1x4xf32> to vector<1x1x4xf32>
    tpu.vector_store %arg6[%c0_30, %c0_31, %c0_32], %60 {strides = array<i32>} : memref<1x1x4xf32, #tpu.memory_space<vmem>>, vector<1x1x4xf32>,
    return
  }
  func.func @transform_0(%arg0: i32, %arg1: i32) -> (i32, i32) {
    %c1_i32 = arith.constant 1 : i32
    %0 = arith.muli %arg0, %c1_i32 : i32
    %1 = arith.addi %0, %arg1 : i32
    %c0_i32 = arith.constant 0 : i32
    %c0_i32_0 = arith.constant 0 : i32
    return %1, %c0_i32 : i32, i32
  }
  func.func @transform_1(%arg0: i32, %arg1: i32) -> (i32, i32) {
    %c0_i32 = arith.constant 0 : i32
    %c0_i32_0 = arith.constant 0 : i32
    %c0_i32_1 = arith.constant 0 : i32
    return %c0_i32, %c0_i32_0 : i32, i32
  }
  func.func @transform_2(%arg0: i32, %arg1: i32) -> (i32, i32) {
    %c0_i32 = arith.constant 0 : i32
    %c0_i32_0 = arith.constant 0 : i32
    %c0_i32_1 = arith.constant 0 : i32
    return %c0_i32, %c0_i32_0 : i32, i32
  }
  func.func @transform_3(%arg0: i32, %arg1: i32) -> (i32, i32) {
    %c0_i32 = arith.constant 0 : i32
    %c0_i32_0 = arith.constant 0 : i32
    %c0_i32_1 = arith.constant 0 : i32
    return %c0_i32, %c0_i32_0 : i32, i32
  }
  func.func @transform_4(%arg0: i32, %arg1: i32) -> (i32, i32, i32) {
    %c0_i32 = arith.constant 0 : i32
    %c0_i32_0 = arith.constant 0 : i32
    %c0_i32_1 = arith.constant 0 : i32
    return %arg0, %c0_i32, %c0_i32_0 : i32, i32, i32
  }
}

</mosaic_0001>

<bundles_post_ra>
// kernel: tpu_custom_call.1
= control target key start
LH: loop header
LB: loop body
LE: loop exit
PB: predicated region body
PF: predicated region fallthrough
CT: control target
= control target key end

     0   :  { %9 = vsyncpa [#allocation3], 0  ;;  %s1241_s0 = inlined_call_operand.hbm [shape: f32[16,128], index: 0, kind: input, shape index: {}]   ;;  %s1242_s1 = inlined_call_operand.vmem [shape: f32[32,32], index: 1, kind: input, shape index: {}]   ;;  %s1243_s2 = inlined_call_operand.vmem [shape: f32[1,32], index: 2, kind: input, shape index: {}]   ;;  %s1244_s3 = inlined_call_operand.vmem [shape: f32[32,1], index: 3, kind: input, shape index: {}]   ;;  %s1245_s4 = inlined_call_operand.hbm [shape: f32[1,1,4], index: 4, kind: output, shape index: {}]  }
   0x1   :  { %10 = vsyncpa [#allocation4], 0  ;;  %s1107_s15 = smov [#allocation2]   ;;  %s1059_s19 = scalar_lea.hbm %s1241_s0, 256 }
   0x2   :  { %s20_s16 = sshll.u32 %s1107_s15, 4  ;;  %p1060_p0 = scmp.ne.s32.totalorder %s1241_s0, %s1059_s19  ;;  %s21_s16 = int_to_ptr.vmem [resolvable:$true] %s20_s16 }
   0x3   :  { %p1063_p1 = scmp.lt.u32.totalorder %s1059_s19, %s1241_s0 }
   0x5   :  { %p1065_p2 = pnand %p1063_p1, %p1060_p0 }
   0x7   :  { %1068 = shalt.err (!%p1065_p2)
}
   0x8   :  { %s1069_s24 = scalar_lea.vmem %s21_s16, 256  ;;  %p1074_p4 = scmp.lt.s32.totalorder %s21_s16, %s21_s16 }
   0x9   :  { %p1070_p3 = scmp.ne.s32.totalorder %s21_s16, %s1069_s24  ;;  %p1075_p5 = scmp.lt.s32.totalorder %s1069_s24, %s1069_s24 }
   0xb   :  { %p1076_p6 = por %p1075_p5, %p1074_p4 }
   0xd   :  { %p1077_p7 = pnand %p1076_p6, %p1070_p3 }
   0xf   :  { %1080 = shalt.err (!%p1077_p7)
}
  0x10   :  { %s1108_s25 = smov 128   ;;  %s1109_s26 = smov 8  }
  0x11   :  { %26 = dma.hbm_to_vmem [thread:$0]  %s1241_s0, 256, %s21_s16, [#allocation3], %s1108_s25, %s1108_s25, %s1109_s26  }
  0x12   :  { %1103 = dma.done.wait [#allocation3], 256  }
  0x13   :  { %1104 = vsyncadd [#allocation3], 4294967040  ;;  %vm71_vm0 = vcmask 261120   ;;  %v63_v0 = vld [vmem:[#allocation2] sm:$0xff]  ;;  %s1110_s5 = smov 96   ;;  %s1111_s6 = smov 64  }
  0x14   :  { %v55_v1 = vld [vmem:[%s1242_s1] sm:$0xff]  ;;  %248 = vrot.lane.b32.xlu0 %v63_v0, %s1110_s5  ;;  %425 = vrot.lane.b32.xlu1 %v63_v0, %s1111_s6  ;;  %v56_v2 = vld [vmem:[%s1242_s1 + $0x8] sm:$0xff]  ;;  %s1112_s12 = smov 32   ;;  %vm238_vm1 = vcmask 7168   ;;  %vm42_vm2 = vcmask 24576   ;;  %s1115_s21 = smov 2  }
  0x15   :  { %v57_v3 = vld [vmem:[%s1242_s1 + $0x10] sm:$0xff]  ;;  %v64_v4 = vld [vmem:[#allocation2 + $0x8] sm:$0xff]  ;;  %v968_v5 = vpack.c.bf16 %v56_v2, %v55_v1  ;;  %v58_v6 = vld [vmem:[%s1242_s1 + $0x18] sm:$0xff]  ;;  %888 = vmatprep.mubr.msk.f32.mxu0 %vm71_vm0, %v63_v0  ;;  %v1113_v2 = vmov 0.0   ;;  %s1116_s22 = smov 3   ;;  %vm793_vm3 = vcmask 15360  }
  0x16   :  { %v972_v7 = vpack.c.bf16 %v58_v6, %v57_v3  ;;  %v59_v8 = vld [vmem:[%s1244_s3] sm:$0xff]  ;;  %v60_v9 = vld [vmem:[%s1244_s3 + $0x8] sm:$0xff]  ;;  %v61_v10 = vld [vmem:[%s1244_s3 + $0x10] sm:$0xff]  ;;  %43 = vst.msk [vmem:[#allocation5] sm:$0x1] %vm42_vm2, %v1113_v2  ;;  %vm795_vm4 = vcmask 23552  }
  0x17   :  { %969 = vmatprep.subr.bf16.mxu0 %v968_v5  ;;  %v1178_v11 = vpack.c.bf16 %v60_v9, %v59_v8  ;;  %v62_v12 = vld [vmem:[%s1244_s3 + $0x18] sm:$0xff]  ;;  %v815_v20 = vld [vmem:[%s1243_s2] ss:$0 sm:$0xff]  ;;  %s1114_s2 = smov 1   ;;  %s1117_s23 = smov [#allocation5]  }
  0x18   :  { %250 = vrot.lane.b32.xlu0 %v64_v4, %s1110_s5  ;;  %427 = vrot.lane.b32.xlu1 %v64_v4, %s1111_s6  ;;  %v1183_v13 = vpack.c.bf16 %v62_v12, %v61_v10  ;;  %s806_s24 = sshll.u32 %s1117_s23, 4  ;;  %s807_s24 = int_to_ptr.vmem [resolvable:$true] %s806_s24 }
  0x19   :  { %971 = vmatpush3.bf16.msra.mxu0 %v968_v5  ;;  %977 = vmatprep.subr.bf16.mxu1 %v1178_v11  ;;  %s1081_s25 = scalar_lea.vmem %s807_s24, 16  ;;  %s1085_s26 = scalar_lea.vmem %s807_s24, 32 }
  0x1a   :  { %973 = vmatprep.subr.bf16.mxu0 %v972_v7  ;;  %979 = vmatpush3.bf16.msra.mxu1 %v1178_v11  ;;  %p1082_p8 = scmp.ne.s32.totalorder %s807_s24, %s1081_s25  ;;  %p1086_p9 = scmp.lt.s32.totalorder %s807_s24, %s807_s24 }
  0x1b   :  { %981 = vmatprep.subr.bf16.mxu1 %v1183_v13  ;;  %p1087_p10 = scmp.lt.s32.totalorder %s1085_s26, %s1081_s25 }
  0x1c   :  { %602 = vrot.lane.b32.xlu0 %v63_v0, %s1112_s12  ;;  %604 = vrot.lane.b32.xlu1 %v64_v4, %s1112_s12 }
  0x1d   :  { %975 = vmatpush3.bf16.msra.mxu0 %v972_v7  ;;  %p1088_p11 = por %p1087_p10, %p1086_p9 }
  0x1e   :  { %985 = vmatprep.subr.bf16.mxu0 %v968_v5  ;;  %983 = vmatpush3.bf16.msra.mxu1 %v1183_v13 }
  0x1f   :  { %993 = vmatprep.subr.bf16.mxu1 %v1178_v11  ;;  %p1089_p12 = pnand %p1088_p11, %p1082_p8 }
  0x20   :  { %889 = vmatmul.mubr.msk.f32.vlgmr.msra.gmra.mrb[0].mxu0 %vm71_vm0, %v64_v4 }
  0x21   :  { %987 = vmatpush3.bf16.msra.mxu0 %v968_v5 }
  0x22   :  { %989 = vmatprep.subr.bf16.mxu0 %v972_v7 }
  0x25   :  { %991 = vmatpush3.bf16.msra.mxu0 %v972_v7 }
  0x26   :  { %1001 = vmatprep.subr.bf16.mxu0 %v968_v5 }
  0x86   :  { %v249_v14 = vpop.permute.xlu0 %248  ;;  %v426_v15 = vpop.permute.xlu1 %425 }
  0x87   :  { %910 = vmatprep.mubr.msk.f32.mxu0 %vm71_vm0, %v249_v14 }
  0x8a   :  { %v251_v16 = vpop.permute.xlu0 %250  ;;  %v428_v17 = vpop.permute.xlu1 %427 }
  0x8b   :  { %911 = vmatmul.mubr.msk.f32.vlgmr.msra.gmra.mrb[2].mxu0 %vm71_vm0, %v251_v16 }
  0x8c   :  { %1003 = vmatpush3.bf16.msra.mxu0 %v968_v5  ;;  %932 = vmatprep.mubr.msk.f32.mxu0 %vm71_vm0, %v426_v15 }
  0x8d   :  { %1005 = vmatprep.subr.bf16.mxu0 %v972_v7 }
  0x8e   :  { %v603_v18 = vpop.permute.xlu0 %602  ;;  %v605_v19 = vpop.permute.xlu1 %604 }
  0x90   :  { %1007 = vmatpush3.bf16.msra.mxu0 %v972_v7 }
  0x91   :  { %1017 = vmatprep.subr.bf16.mxu0 %v968_v5 }
  0x93   :  { %933 = vmatmul.mubr.msk.f32.vlgmr.msra.gmra.mrb[4].mxu0 %vm71_vm0, %v428_v17 }
  0x94   :  { %1019 = vmatpush3.bf16.msra.mxu0 %v968_v5  ;;  %954 = vmatprep.mubr.msk.f32.mxu0 %vm71_vm0, %v603_v18 }
  0x95   :  { %1021 = vmatprep.subr.bf16.mxu0 %v972_v7 }
  0x98   :  { %1023 = vmatpush3.bf16.msra.mxu0 %v972_v7 }
  0x9b   :  { %955 = vmatmul.mubr.msk.f32.vlgmr.msra.gmra.mrb[6].mxu0 %vm71_vm0, %v605_v19 }
  0xf3   :  { %v890_v21 = vpop.f32.mrb[0].mxu0 }
  0xf4   :  { %v150_v22 = vadd.f32 %v890_v21, %v815_v20  ;;  %v144_v23 = vpop.f32.mrb[1].mxu0 }
  0xf5   :  { %v145_v24 = vadd.f32 %v815_v20, %v144_v23 }
  0xf6   :  { %1043 = vtanh.f32 %v150_v22 }
  0xf7   :  { %1045 = vtanh.f32 %v145_v24 }
 0x100   :  { %v1044_v25 = vpop.eup %1043 }
 0x101   :  { %v1046_v26 = vpop.eup %1045 }
 0x102   :  { %899 = vmatprep.mubr.msk.f32.mxu1 %vm71_vm0, %v1046_v26 }
 0x103   :  { %900 = vmatmul.mubr.msk.f32.vlgmr.msra.gmra.mrb[0].mxu1 %vm71_vm0, %v1044_v25 }
 0x104   :  { %995 = vmatpush3.bf16.msra.mxu1 %v1178_v11 }
 0x105   :  { %997 = vmatprep.subr.bf16.mxu1 %v1183_v13 }
 0x108   :  { %999 = vmatpush3.bf16.msra.mxu1 %v1183_v13 }
 0x109   :  { %1009 = vmatprep.subr.bf16.mxu1 %v1178_v11 }
 0x15e   :  { %v912_v27 = vpop.f32.mrb[2].mxu0 }
 0x15f   :  { %v328_v28 = vadd.f32 %v912_v27, %v815_v20  ;;  %v322_v29 = vpop.f32.mrb[3].mxu0 }
 0x160   :  { %v323_v30 = vadd.f32 %v815_v20, %v322_v29  ;;  %v779_v29 = vld [vmem:[#allocation5] sm:$0x1] }
 0x162   :  { %1047 = vtanh.f32 %v323_v30 }
 0x163   :  { %1049 = vtanh.f32 %v328_v28 }
 0x166   :  { %v934_v31 = vpop.f32.mrb[4].mxu0 }
 0x167   :  { %v505_v32 = vadd.f32 %v934_v31, %v815_v20  ;;  %v499_v33 = vpop.f32.mrb[5].mxu0 }
 0x168   :  { %v500_v34 = vadd.f32 %v815_v20, %v499_v33 }
 0x169   :  { %1051 = vtanh.f32 %v505_v32 }
 0x16a   :  { %1053 = vtanh.f32 %v500_v34 }
 0x16c   :  { %v1048_v35 = vpop.eup %1047 }
 0x16d   :  { %v1050_v36 = vpop.eup %1049  ;;  %921 = vmatprep.mubr.msk.f32.mxu1 %vm71_vm0, %v1048_v35 }
 0x16e   :  { %v956_v37 = vpop.f32.mrb[6].mxu0  ;;  %922 = vmatmul.mubr.msk.f32.vlgmr.msra.gmra.mrb[2].mxu1 %vm71_vm0, %v1050_v36 }
 0x16f   :  { %v682_v38 = vadd.f32 %v956_v37, %v815_v20  ;;  %1011 = vmatpush3.bf16.msra.mxu1 %v1178_v11  ;;  %v676_v39 = vpop.f32.mrb[7].mxu0 }
 0x170   :  { %v677_v40 = vadd.f32 %v815_v20, %v676_v39  ;;  %1013 = vmatprep.subr.bf16.mxu1 %v1183_v13 }
 0x172   :  { %1055 = vtanh.f32 %v677_v40 }
 0x173   :  { %v1052_v41 = vpop.eup %1051  ;;  %1057 = vtanh.f32 %v682_v38  ;;  %1015 = vmatpush3.bf16.msra.mxu1 %v1183_v13 }
 0x174   :  { %v1054_v42 = vpop.eup %1053  ;;  %1025 = vmatprep.subr.bf16.mxu1 %v1178_v11 }
 0x175   :  { %943 = vmatprep.mubr.msk.f32.mxu1 %vm71_vm0, %v1054_v42 }
 0x176   :  { %944 = vmatmul.mubr.msk.f32.vlgmr.msra.gmra.mrb[4].mxu1 %vm71_vm0, %v1052_v41 }
 0x177   :  { %1027 = vmatpush3.bf16.msra.mxu1 %v1178_v11 }
 0x178   :  { %1029 = vmatprep.subr.bf16.mxu1 %v1183_v13 }
 0x17b   :  { %1031 = vmatpush3.bf16.msra.mxu1 %v1183_v13 }
 0x17c   :  { %v1056_v43 = vpop.eup %1055 }
 0x17d   :  { %v1058_v44 = vpop.eup %1057  ;;  %965 = vmatprep.mubr.msk.f32.mxu1 %vm71_vm0, %v1056_v43 }
 0x17e   :  { %966 = vmatmul.mubr.msk.f32.vlgmr.msra.gmra.mrb[6].mxu1 %vm71_vm0, %v1058_v44 }
 0x1d6   :  { %v901_v45 = vpop.f32.mrb[0].mxu1 }
 0x1d7   :  { %v240_v46 = vsel %vm238_vm1, %v901_v45, 0.0  ;;  %v227_v47 = vpop.f32.mrb[1].mxu1 }
 0x1d8   :  { %v239_v48 = vsel %vm238_vm1, %v227_v47, 0.0 }
 0x1d9   :  { %v241_v49 = vadd.f32 %v240_v46, %v239_v48 }
 0x1db   :  { %v242_v20 = vrot.slane %v241_v49, 4 }
 0x1dd   :  { %v243_v21 = vadd.f32 %v242_v20, %v241_v49 }
 0x1df   :  { %v244_v22 = vrot.slane %v243_v21, 2 }
 0x1e1   :  { %v245_v23 = vadd.f32 %v244_v22, %v243_v21 }
 0x1e3   :  { %v246_v24 = vrot.slane %v245_v23, 1 }
 0x1e5   :  { %v247_v26 = vadd.f32 %v246_v24, %v245_v23 }
 0x241   :  { %v923_v50 = vpop.f32.mrb[2].mxu1 }
 0x242   :  { %v417_v51 = vsel %vm238_vm1, %v923_v50, 0.0  ;;  %v405_v52 = vpop.f32.mrb[3].mxu1 }
 0x243   :  { %v416_v53 = vsel %vm238_vm1, %v405_v52, 0.0 }
 0x244   :  { %v418_v54 = vadd.f32 %v417_v51, %v416_v53 }
 0x246   :  { %v419_v55 = vrot.slane %v418_v54, 4 }
 0x248   :  { %v420_v56 = vadd.f32 %v419_v55, %v418_v54 }
 0x249   :  { %v945_v57 = vpop.f32.mrb[4].mxu1 }
 0x24a   :  { %v421_v58 = vrot.slane %v420_v56, 2  ;;  %v594_v59 = vsel %vm238_vm1, %v945_v57, 0.0  ;;  %v582_v60 = vpop.f32.mrb[5].mxu1 }
 0x24b   :  { %v593_v61 = vsel %vm238_vm1, %v582_v60, 0.0 }
 0x24c   :  { %v422_v62 = vadd.f32 %v421_v58, %v420_v56  ;;  %v595_v63 = vadd.f32 %v594_v59, %v593_v61 }
 0x24e   :  { %v596_v0 = vrot.slane %v595_v63, 4  ;;  %v423_v1 = vrot.slane %v422_v62, 1 }
 0x250   :  { %v597_v3 = vadd.f32 %v596_v0, %v595_v63  ;;  %v424_v4 = vadd.f32 %v423_v1, %v422_v62 }
 0x251   :  { %v967_v5 = vpop.f32.mrb[6].mxu1 }
 0x252   :  { %v598_v6 = vrot.slane %v597_v3, 2  ;;  %v771_v7 = vsel %vm238_vm1, %v967_v5, 0.0  ;;  %v759_v8 = vpop.f32.mrb[7].mxu1  ;;  %781 = vrot.lane.b32.xlu0 %v424_v4, %s1114_s2 }
 0x253   :  { %v770_v9 = vsel %vm238_vm1, %v759_v8, 0.0 }
 0x254   :  { %v599_v10 = vadd.f32 %v598_v6, %v597_v3  ;;  %v772_v11 = vadd.f32 %v771_v7, %v770_v9 }
 0x256   :  { %v773_v12 = vrot.slane %v772_v11, 4  ;;  %v600_v13 = vrot.slane %v599_v10, 1 }
 0x258   :  { %v774_v14 = vadd.f32 %v773_v12, %v772_v11  ;;  %v601_v15 = vadd.f32 %v600_v13, %v599_v10 }
 0x25a   :  { %v775_v16 = vrot.slane %v774_v14, 2  ;;  %785 = vrot.lane.b32.xlu1 %v601_v15, %s1115_s21 }
 0x25c   :  { %v776_v17 = vadd.f32 %v775_v16, %v774_v14 }
 0x25e   :  { %v777_v18 = vrot.slane %v776_v17, 1 }
 0x260   :  { %v778_v19 = vadd.f32 %v777_v18, %v776_v17 }
 0x262   :  { %789 = vrot.lane.b32.xlu0 %v778_v19, %s1116_s22 }
 0x2c4   :  { %v782_v25 = vpop.permute.xlu0 %781 }
 0x2c5   :  { %v792_v28 = vsel %vm238_vm1, %v247_v26, %v782_v25 }
 0x2cc   :  { %v786_v27 = vpop.permute.xlu1 %785 }
 0x2cd   :  { %v794_v30 = vsel %vm793_vm3, %v792_v28, %v786_v27 }
 0x2d4   :  { %v790_v31 = vpop.permute.xlu0 %789 }
 0x2d5   :  { %v796_v32 = vsel %vm795_vm4, %v794_v30, %v790_v31 }
 0x2d6   :  { %v797_v33 = vadd.f32 %v796_v32, %v779_v29 }
 0x2d8   :  { %799 = vst.msk [vmem:[#allocation5] sm:$0x1] %vm42_vm2, %v797_v33 }
 0x2d9   :  { %1092 = shalt.err (!%p1089_p12)
}
 0x2da   :  { %s1093_s29 = scalar_lea.hbm %s1245_s4, 16 }
 0x2db   :  { %p1094_p13 = scmp.ne.s32.totalorder %s1245_s4, %s1093_s29  ;;  %p1097_p0 = scmp.lt.u32.totalorder %s1093_s29, %s1245_s4 }
 0x2dd   :  { %p1099_p1 = pnand %p1097_p0, %p1094_p13 }
 0x2df   :  { %1102 = shalt.err (!%p1099_p1)
}
 0x2e0   :  { %809 = dma.vmem_to_hbm [thread:$0]  %s807_s24, 16, %s1245_s4, [#allocation4]  }
 0x2e1   :  { %1105 = dma.done.wait [#allocation4], 16  }
 0x2e2   :  { %1106 = vsyncadd [#allocation4], 4294967280 }
 0x2e3   :  { %813 = vsyncpa [#allocation3], 1 }
 0x2e4   :  { %814 = vsyncpa [#allocation4], 1 }

</bundles_post_ra>
